<compile_context>
chip_gen: v6e
topology: v6e:2x2x1
jax: 0.10.0
libtpu: 0.0.40
codegen_flags: <defaults>
</compile_context>

<pallas_src>
import functools

import jax
import jax.numpy as jnp
from jax.experimental import pallas as pl
from jax.experimental.pallas import tpu as pltpu


def _rmsnorm_kernel(x_ref, w_ref, o_ref, *, eps: float):
    # x_ref: (block_rows, hidden)   w_ref: (1, hidden)   o_ref: (block_rows, hidden)
    x = x_ref[...].astype(jnp.float32)
    w = w_ref[...].astype(jnp.float32)                # broadcasts over rows
    var = jnp.mean(x * x, axis=-1, keepdims=True)     # per-row reduction (XLU)
    inv = jax.lax.rsqrt(var + eps)                    # EUP — free under the DMA
    o_ref[...] = (x * inv * w).astype(o_ref.dtype)


def _vmem_limit_bytes() -> int:
    """Per-generation scoped-VMEM limit: v7x has 64 MiB physical, v5e/v6e 128 MiB."""
    try:
        kind = jax.devices()[0].device_kind.lower()
    except Exception:
        kind = ""
    if "v7" in kind:
        return 48 * 1024 * 1024
    return 100 * 1024 * 1024


def _pick_block_rows(rows: int, hidden: int, dtype, vmem_limit: int) -> int:
    """Largest row tile that fits the VMEM budget, rounded to sublane packing."""
    dtype_bytes = jnp.dtype(dtype).itemsize
    # Sublane packing: f32 -> 8 rows, bf16 -> 16, int8/fp8 -> 32.
    packing = 8 * max(1, 4 // dtype_bytes)
    # Per-row VMEM cost: double-buffered input + output tiles (2 * 2 * dtype_bytes)
    # plus ~3 live f32 temporaries of the tile inside the kernel body.
    per_row = hidden * (4 * dtype_bytes + 3 * 4)
    budget = int(0.6 * vmem_limit)
    max_rows = max(packing, budget // max(per_row, 1))
    block_rows = min(1024, max_rows)
    block_rows = max(packing, (block_rows // packing) * packing)
    if block_rows >= rows:
        # Single block spanning all rows — a full-extent block is always legal.
        return rows
    return block_rows


def rms_norm(hidden_states: jax.Array, weight: jax.Array, eps: float = 1e-6,
             block_rows: int | None = None) -> jax.Array:
    """RMSNorm over the last axis of `hidden_states`."""
    orig_shape = hidden_states.shape
    orig_dtype = hidden_states.dtype
    hidden = orig_shape[-1]
    x2d = hidden_states.reshape(-1, hidden)
    rows = x2d.shape[0]

    vmem_limit = _vmem_limit_bytes()
    if block_rows is None:
        block_rows = _pick_block_rows(rows, hidden, orig_dtype, vmem_limit)
    else:
        block_rows = min(block_rows, rows)
        if block_rows < rows:
            # Keep the (8, 128) block-shape constraint satisfied.
            block_rows = max(8, (block_rows // 8) * 8)

    w2d = weight.reshape(1, hidden)

    itemsize = jnp.dtype(orig_dtype).itemsize
    cost = pl.CostEstimate(
        flops=4 * rows * hidden,
        transcendentals=rows,
        bytes_accessed=2 * rows * hidden * itemsize + hidden * weight.dtype.itemsize,
    )

    grid = (pl.cdiv(rows, block_rows),)
    out = pl.pallas_call(
        functools.partial(_rmsnorm_kernel, eps=eps),
        out_shape=jax.ShapeDtypeStruct((rows, hidden), orig_dtype),
        grid_spec=pltpu.PrefetchScalarGridSpec(
            num_scalar_prefetch=0,
            grid=grid,
            in_specs=[
                pl.BlockSpec((block_rows, hidden), lambda i: (i, 0)),
                pl.BlockSpec((1, hidden), lambda i: (0, 0)),
            ],
            out_specs=pl.BlockSpec((block_rows, hidden), lambda i: (i, 0)),
        ),
        compiler_params=pltpu.CompilerParams(
            dimension_semantics=("parallel",),
            vmem_limit_bytes=vmem_limit,
        ),
        cost_estimate=cost,
    )(x2d, w2d)

    return out.reshape(orig_shape)


class RMSNorm:
    """JAX counterpart of the PyTorch RMSNorm module (weight initialized to ones)."""

    def __init__(self, hidden_size: int, eps: float = 1e-6):
        if not isinstance(hidden_size, int):
            raise ValueError("RMSNorm only supports 1D hidden size")
        self.weight = jnp.ones((hidden_size,), dtype=jnp.float32)
        self.variance_epsilon = eps

    def __call__(self, hidden_states: jax.Array) -> jax.Array:
        return rms_norm(hidden_states, self.weight, eps=self.variance_epsilon)


def _ref_rmsnorm(x, w, eps=1e-6):
    xf = x.astype(jnp.float32)
    inv = jax.lax.rsqrt(jnp.mean(xf * xf, axis=-1, keepdims=True) + eps)
    return (xf * inv * w.astype(jnp.float32)).astype(x.dtype)


if __name__ == "__main__":
    key = jax.random.PRNGKey(0)
    batch, seq, hidden = 2, 8, 256
    x = jax.random.normal(key, (batch, seq, hidden), dtype=jnp.bfloat16)

    module = RMSNorm(hidden)
    # Make the weight non-trivial but deterministic.
    module.weight = (1.0 + 0.01 * jnp.arange(hidden, dtype=jnp.float32))

    out = module(x)
    jax.block_until_ready(out)

    ref = _ref_rmsnorm(x, module.weight, eps=module.variance_epsilon)
    assert out.shape == x.shape and out.dtype == x.dtype
    assert jnp.allclose(out.astype(jnp.float32), ref.astype(jnp.float32),
                        atol=1e-2, rtol=1e-2)

    # Exercise the ragged-row (partial last block, masked-write) path:
    # 18 rows with 16-row blocks -> last block has only 2 valid rows.
    x2 = jax.random.normal(jax.random.PRNGKey(1), (18, hidden), dtype=jnp.bfloat16)
    out2 = rms_norm(x2, module.weight, eps=module.variance_epsilon, block_rows=16)
    jax.block_until_ready(out2)
    ref2 = _ref_rmsnorm(x2, module.weight)
    assert out2.shape == x2.shape and out2.dtype == x2.dtype
    assert jnp.allclose(out2.astype(jnp.float32), ref2.astype(jnp.float32),
                        atol=1e-2, rtol=1e-2)

    # f32 path (different sublane packing / block rounding).
    x3 = jax.random.normal(jax.random.PRNGKey(2), (32, hidden), dtype=jnp.float32)
    out3 = rms_norm(x3, module.weight, eps=module.variance_epsilon)
    jax.block_until_ready(out3)
    ref3 = _ref_rmsnorm(x3, module.weight)
    assert jnp.allclose(out3, ref3, atol=1e-5, rtol=1e-5)

    print("KERNEL_OK")
</pallas_src>

<mosaic_0001>
module attributes {stable_mosaic.version = 11 : i64} {
  func.func @_rmsnorm_kernel(%arg0: i32, %arg1: memref<16x256xbf16, #tpu.memory_space<vmem>>, %arg2: memref<1x256xf32, #tpu.memory_space<vmem>>, %arg3: memref<16x256xbf16, #tpu.memory_space<vmem>>) attributes {dimension_semantics = [#tpu.dimension_semantics<parallel>], iteration_bounds = array<i64: 1>, scalar_prefetch = 0 : i64, scratch_operands = 0 : i64, tpu.core_type = #tpu.core_type<tc>, window_params = [{transform_indices = @transform_0, window_bounds = array<i64: 16, 256>}, {pipeline_mode = #tpu.pipeline_mode<synchronous>, transform_indices = @transform_1, window_bounds = array<i64: 1, 256>}, {transform_indices = @transform_2, window_bounds = array<i64: 16, 256>}]} {
    %c0 = arith.constant 0 : index
    %c0_0 = arith.constant 0 : index
    %0 = vector.load %arg1[%c0, %c0_0] : memref<16x256xbf16, #tpu.memory_space<vmem>>, vector<16x256xbf16>
    %1 = arith.extf %0 : vector<16x256xbf16> to vector<16x256xf32>
    %c0_1 = arith.constant 0 : index
    %c0_2 = arith.constant 0 : index
    %2 = vector.load %arg2[%c0_1, %c0_2] : memref<1x256xf32, #tpu.memory_space<vmem>>, vector<1x256xf32>
    %3 = arith.mulf %1, %1 : vector<16x256xf32>
    %cst = arith.constant dense<0.000000e+00> : vector<16xf32>
    %4 = vector.multi_reduction <add>, %3, %cst [1] : vector<16x256xf32> to vector<16xf32>
    %5 = vector.shape_cast %4 : vector<16xf32> to vector<16x1xf32>
    %cst_3 = arith.constant 2.560000e+02 : f32
    %6 = vector.broadcast %cst_3 : f32 to vector<16x1xf32>
    %7 = arith.divf %5, %6 : vector<16x1xf32>
    %cst_4 = arith.constant 9.99999997E-7 : f32
    %8 = vector.broadcast %cst_4 : f32 to vector<16x1xf32>
    %9 = arith.addf %7, %8 : vector<16x1xf32>
    %10 = math.rsqrt %9 : vector<16x1xf32>
    %11 = vector.broadcast %10 : vector<16x1xf32> to vector<16x256xf32>
    %12 = arith.mulf %1, %11 : vector<16x256xf32>
    %13 = vector.broadcast %2 : vector<1x256xf32> to vector<16x256xf32>
    %14 = arith.mulf %12, %13 : vector<16x256xf32>
    %15 = arith.truncf %14 : vector<16x256xf32> to vector<16x256xbf16>
    %c0_5 = arith.constant 0 : index
    %c0_6 = arith.constant 0 : index
    %16 = vector.load %arg3[%c0_5, %c0_6] : memref<16x256xbf16, #tpu.memory_space<vmem>>, vector<16x256xbf16>
    tpu.vector_store %arg3[%c0_5, %c0_6], %15 {strides = array<i32>} : memref<16x256xbf16, #tpu.memory_space<vmem>>, vector<16x256xbf16>,
    return
  }
  func.func @transform_0(%arg0: i32) -> (i32, i32) {
    %c0_i32 = arith.constant 0 : i32
    %c0_i32_0 = arith.constant 0 : i32
    return %arg0, %c0_i32 : i32, i32
  }
  func.func @transform_1(%arg0: i32) -> (i32, i32) {
    %c0_i32 = arith.constant 0 : i32
    %c0_i32_0 = arith.constant 0 : i32
    %c0_i32_1 = arith.constant 0 : i32
    return %c0_i32, %c0_i32_0 : i32, i32
  }
  func.func @transform_2(%arg0: i32) -> (i32, i32) {
    %c0_i32 = arith.constant 0 : i32
    %c0_i32_0 = arith.constant 0 : i32
    return %arg0, %c0_i32 : i32, i32
  }
}

</mosaic_0001>

<bundles_post_ra>
// kernel: tpu_custom_call.1
= control target key start
LH: loop header
LB: loop body
LE: loop exit
PB: predicated region body
PF: predicated region fallthrough
CT: control target
= control target key end

     0   :  { %7 = vsyncpa [#allocation3], 0  ;;  %s227_s0 = inlined_call_operand.hbm [shape: bf16[16,256], index: 0, kind: input, shape index: {}]   ;;  %s228_s1 = inlined_call_operand.hbm [shape: f32[1,256], index: 1, kind: input, shape index: {}]   ;;  %s229_s2 = inlined_call_operand.hbm [shape: bf16[16,256], index: 2, kind: output, shape index: {}]  }
   0x1   :  { %8 = vsyncpa [#allocation6], 0 }
   0x2   :  { %9 = vsyncpa [#allocation4], 0  ;;  %s192_s9 = smov [#allocation2]  }
   0x3   :  { %s15_s10 = sshll.u32 %s192_s9, 4  ;;  %s16_s10 = int_to_ptr.vmem [resolvable:$true] %s15_s10 }
   0x4   :  { %s134_s11 = scalar_lea.vmem %s16_s10, 256  ;;  %p139_p1 = scmp.lt.s32.totalorder %s16_s10, %s16_s10 }
   0x5   :  { %p135_p0 = scmp.ne.s32.totalorder %s16_s10, %s134_s11  ;;  %p140_p2 = scmp.lt.s32.totalorder %s134_s11, %s134_s11 }
   0x7   :  { %p141_p3 = por %p140_p2, %p139_p1 }
   0x9   :  { %p142_p4 = pnand %p141_p3, %p135_p0 }
   0xb   :  { %145 = shalt.err (!%p142_p4)
}
   0xc   :  { %s193_s12 = smov 128   ;;  %s194_s13 = smov 8  }
   0xd   :  { %21 = dma.hbm_to_vmem [thread:$0]  %s227_s0, 256, %s16_s10, [#allocation3], %s193_s12, %s193_s12, %s194_s13  }
   0xe   :  { %s195_s16 = smov [#allocation5]  }
   0xf   :  { %s28_s17 = sshll.u32 %s195_s16, 4  ;;  %s29_s17 = int_to_ptr.vmem [resolvable:$true] %s28_s17 }
  0x10   :  { %s154_s18 = scalar_lea.vmem %s29_s17, 32  ;;  %p159_p6 = scmp.lt.s32.totalorder %s29_s17, %s29_s17 }
  0x11   :  { %p155_p5 = scmp.ne.s32.totalorder %s29_s17, %s154_s18  ;;  %p160_p7 = scmp.lt.s32.totalorder %s154_s18, %s154_s18 }
  0x13   :  { %p161_p8 = por %p160_p7, %p159_p6 }
  0x15   :  { %p162_p9 = pnand %p161_p8, %p155_p5 }
  0x17   :  { %165 = shalt.err (!%p162_p9)
}
  0x18   :  { %31 = dma.hbm_to_vmem [thread:$0]  %s228_s1, 32, %s29_s17, [#allocation6]  }
  0x19   :  { %186 = dma.done.wait [#allocation3], 256  }
  0x1a   :  { %187 = vsyncadd [#allocation3], 4294967040 }
  0x1b   :  { %188 = dma.done.wait [#allocation6], 32  }
  0x1c   :  { %189 = vsyncadd [#allocation6], 4294967264  ;;  %v38_v0 = vld [vmem:[#allocation2] sm:$0xff]  ;;  %v39_v1 = vld [vmem:[#allocation2 + $0x8] sm:$0xff]  ;;  %v67_v17 = vlaneseq  ;;  %s196_s0 = smov [#allocation7]  }
  0x1d   :  { %v40_v2 = vunpack.c.l.bf16 %v38_v0  ;;  %v41_v3 = vunpack.c.h.bf16 %v38_v0  ;;  %v42_v4 = vunpack.c.l.bf16 %v39_v1  ;;  %v43_v5 = vunpack.c.h.bf16 %v39_v1  ;;  %v44_v22 = vld [vmem:[#allocation5] sm:$0x3]  ;;  %s100_s1 = sshll.u32 %s196_s0, 4  ;;  %s101_s1 = int_to_ptr.vmem [resolvable:$true] %s100_s1 }
  0x1e   :  { %v68_v19 = vshrl.u32 %v67_v17, 7  ;;  %s166_s21 = scalar_lea.vmem %s101_s1, 256  ;;  %p171_p11 = scmp.lt.s32.totalorder %s101_s1, %s101_s1 }
  0x1f   :  { %v45_v6 = vmul.f32 %v40_v2, %v40_v2  ;;  %v46_v7 = vmul.f32 %v41_v3, %v41_v3  ;;  %v47_v8 = vmul.f32 %v42_v4, %v42_v4  ;;  %v48_v9 = vmul.f32 %v43_v5, %v43_v5  ;;  %p167_p10 = scmp.ne.s32.totalorder %s101_s1, %s166_s21  ;;  %p172_p12 = scmp.lt.s32.totalorder %s166_s21, %s166_s21 }
  0x20   :  { %v69_v20 = vsub.s32 0, %v68_v19  ;;  %v73_v21 = vsub.s32 1, %v68_v19 }
  0x21   :  { %v49_v10 = vadd.f32 %v46_v7, %v45_v6  ;;  %v52_v11 = vadd.f32 %v48_v9, %v47_v8  ;;  %p173_p13 = por %p172_p12, %p171_p11 }
  0x22   :  { %v70_v23 = vrot.slane %v44_v22, %v69_v20  ;;  %v74_v24 = vrot.slane %v44_v22, %v73_v21 }
  0x23   :  { %50 = vadd.xlane.f32.xlu0 %v49_v10  ;;  %p174_p0 = pnand %p173_p13, %p167_p10 }
  0x27   :  { %53 = vadd.xlane.f32.xlu0 %v52_v11 }
  0xac   :  { %v51_v12 = vpop.xlane.xlu0 %50 }
  0xad   :  { %v56_v13 = vmul.f32 0.00390625, %v51_v12 }
  0xaf   :  { %v58_v14 = vadd.f32 1e-06, %v56_v13 }
  0xb0   :  { %v54_v15 = vpop.xlane.xlu0 %53 }
  0xb1   :  { %122 = vrsqrt.f32 %v58_v14  ;;  %v57_v16 = vmul.f32 0.00390625, %v54_v15 }
  0xb3   :  { %v59_v18 = vadd.f32 1e-06, %v57_v16 }
  0xb5   :  { %124 = vrsqrt.f32 %v59_v18 }
  0xbe   :  { %v123_v25 = vpop.eup %122 }
  0xbf   :  { %v62_v26 = vmul.f32 %v123_v25, %v40_v2  ;;  %v63_v27 = vmul.f32 %v123_v25, %v41_v3 }
  0xc1   :  { %v77_v28 = vmul.f32 %v70_v23, %v62_v26  ;;  %v78_v29 = vmul.f32 %v74_v24, %v63_v27 }
  0xc2   :  { %v125_v30 = vpop.eup %124 }
  0xc3   :  { %v64_v31 = vmul.f32 %v125_v30, %v42_v4  ;;  %v65_v32 = vmul.f32 %v125_v30, %v43_v5  ;;  %v115_v33 = vpack.c.bf16 %v78_v29, %v77_v28 }
  0xc5   :  { %v79_v34 = vmul.f32 %v70_v23, %v64_v31  ;;  %v80_v35 = vmul.f32 %v74_v24, %v65_v32  ;;  %93 = vst [vmem:[#allocation7] sm:$0xff] %v115_v33 }
  0xc7   :  { %v116_v36 = vpack.c.bf16 %v80_v35, %v79_v34 }
  0xc9   :  { %94 = vst [vmem:[#allocation7 + $0x8] sm:$0xff] %v116_v36 }
  0xca   :  { %177 = shalt.err (!%p174_p0)
}
  0xcb   :  { %106 = dma.vmem_to_hbm [thread:$0]  %s101_s1, 256, %s229_s2, [#allocation4], %s193_s12, %s193_s12, %s194_s13  }
  0xcc   :  { %190 = dma.done.wait [#allocation4], 256  }
  0xcd   :  { %191 = vsyncadd [#allocation4], 4294967040 }
  0xce   :  { %110 = vsyncpa [#allocation3], 1 }
  0xcf   :  { %111 = vsyncpa [#allocation6], 1 }
  0xd0   :  { %112 = vsyncpa [#allocation4], 1 }

</bundles_post_ra>
